<compile_context>
chip_gen: v7x
topology: tpu7x:2x2x1
jax: 0.10.0
libtpu: 0.0.40
codegen_flags: <defaults>
</compile_context>

<pallas_src>
import math

import jax
import jax.numpy as jnp
from jax import lax
from jax.experimental import pallas as pl
from jax.experimental.pallas import tpu as pltpu

# ---------------- configuration (small, consistent with the module) ---------
STATE_DIM = 12
ACTION_DIM = 4
N_AGENTS = 8
HIDDEN_DIM = 32
N_HEADS = 4
HEAD_DIM = HIDDEN_DIM // N_HEADS
BATCH = 2
LN_EPS = 1e-5                      # PyTorch nn.LayerNorm default
IN_DIM = STATE_DIM + ACTION_DIM
NH2 = N_HEADS * N_HEADS            # 16 = number of (query-head, key-head) logits
WIDE = HIDDEN_DIM * N_HEADS        # 128 = lane-dense width of attention temporaries


def _rnd8(r):
    return (r + 7) // 8 * 8


# ---- single parameter/constant slab: row offsets (all multiples of 8) -------
O_W1S = 0                                   # w1[:STATE_DIM]      [12, 32]
O_W1A = O_W1S + _rnd8(STATE_DIM)            # w1[STATE_DIM:]      [ 4, 32]
O_W2 = O_W1A + _rnd8(ACTION_DIM)            # w2                  [32, 32]
O_WKQV = O_W2 + _rnd8(HIDDEN_DIM)           # [wk|wq|wv]          [32, 96]
O_W3 = O_WKQV + _rnd8(HIDDEN_DIM)           # w3                  [32, 32]
O_VEC = O_W3 + _rnd8(HIDDEN_DIM)            # bias / LN / w4 rows [14, 32]
N_VEC = 14
O_RQ = O_VEC + _rnd8(N_VEC)                 # q-expand / fold sel [32, 128]
O_RK = O_RQ + _rnd8(HIDDEN_DIM)             # k/v tile selector   [32, 128]
O_E = O_RK + _rnd8(HIDDEN_DIM)              # segment selector    [16, 128]
O_G = O_E + _rnd8(NH2)                      # group-sum selector  [16, 16]
SLAB_ROWS = O_G + _rnd8(NH2)                # 232
SLAB_COLS = WIDE                            # 128


def _layernorm(x, g, b):
    mean = jnp.mean(x, axis=-1, keepdims=True)
    var = jnp.mean((x - mean) ** 2, axis=-1, keepdims=True)
    return (x - mean) * jax.lax.rsqrt(var + LN_EPS) * g + b


# --------------------------- Pallas kernel ----------------------------------
def attention_critic_kernel(s_ref, a_ref, slab_ref, o_ref):
    H = HIDDEN_DIM
    xs = s_ref[...]                                      # [TM, STATE_DIM]
    xa = a_ref[...]                                      # [TM, ACTION_DIM]

    # ---- parameter / constant loads from the single slab --------------------
    w1s = slab_ref[O_W1S:O_W1S + STATE_DIM, 0:H]         # [12, H]
    w1a = slab_ref[O_W1A:O_W1A + ACTION_DIM, 0:H]        # [ 4, H]
    w2 = slab_ref[O_W2:O_W2 + H, 0:H]                    # [H, H]
    wkqv = slab_ref[O_WKQV:O_WKQV + H, 0:3 * H]          # [H, 3H]
    w3 = slab_ref[O_W3:O_W3 + H, 0:H]                    # [H, H]
    vec = slab_ref[O_VEC:O_VEC + N_VEC, 0:H]             # [14, H]
    rq = slab_ref[O_RQ:O_RQ + H, :]                      # [H, 128]
    rk = slab_ref[O_RK:O_RK + H, :]                      # [H, 128]
    se = slab_ref[O_E:O_E + NH2, :]                      # [16, 128]
    gsum = slab_ref[O_G:O_G + NH2, 0:NH2]                # [16, 16]

    b1, g1, be1 = vec[0:1], vec[1:2], vec[2:3]
    b2, g2, be2 = vec[3:4], vec[4:5], vec[5:6]
    bk, bq, bv = vec[6:7], vec[7:8], vec[8:9]
    b3, g3, be3 = vec[9:10], vec[10:11], vec[11:12]
    w4row = vec[12:13]                                   # [1, H]
    b4 = vec[13:14, 0:1]                                 # [1, 1]

    # ---- encoder: Linear -> ReLU -> LN -> Linear -> ReLU -> LN ---------------
    h = jnp.dot(xs, w1s, preferred_element_type=jnp.float32)
    h = h + jnp.dot(xa, w1a, preferred_element_type=jnp.float32) + b1
    h = jnp.maximum(h, 0.0)
    h = _layernorm(h, g1, be1)
    h = jnp.maximum(jnp.dot(h, w2, preferred_element_type=jnp.float32) + b2, 0.0)
    enc = _layernorm(h, g2, be2)                         # [TM, H]

    # ---- fused K/Q/V projection ----------------------------------------------
    kqv = jnp.dot(enc, wkqv, preferred_element_type=jnp.float32)   # [TM, 3H]
    k = kqv[:, 0:H] + bk
    q = kqv[:, H:2 * H] + bq
    v = kqv[:, 2 * H:3 * H] + bv

    # ---- heads-vs-heads attention: one 128-lane-wide pass --------------------
    # q_wide[:, 32*h1+8*h2+d] = q[:, 8*h1+d]; k/v_wide[:, 32*h1+8*h2+d] = k/v[:, 8*h2+d]
    q_wide = jnp.dot(q, rq, preferred_element_type=jnp.float32)    # [TM, 128]
    k_wide = jnp.dot(k, rk, preferred_element_type=jnp.float32)    # [TM, 128]
    v_wide = jnp.dot(v, rk, preferred_element_type=jnp.float32)    # [TM, 128]
    dn = (((1,), (1,)), ((), ()))                                   # contract last dims
    logits = lax.dot_general(q_wide * k_wide, se, dimension_numbers=dn,
                             preferred_element_type=jnp.float32)    # [TM, 16]
    logits = logits * (1.0 / math.sqrt(HEAD_DIM))
    # Global row max is a valid stabilizer for the grouped softmax
    # (softmax is invariant to subtracting the same constant from every column).
    m = jnp.max(logits, axis=-1, keepdims=True)
    e = jnp.exp(logits - m)
    denom = jnp.dot(e, gsum, preferred_element_type=jnp.float32)    # per-group sums [TM, 16]
    att = e / denom
    # TODO(synk): nn.Dropout(0.1) on `att` is identity in eval mode;
    # training-mode dropout (pltpu.prng_seed/prng_random_bits) not implemented.
    att_wide = jnp.dot(att, se, preferred_element_type=jnp.float32)  # [TM, 128]
    attended = lax.dot_general(att_wide * v_wide, rq, dimension_numbers=dn,
                               preferred_element_type=jnp.float32)   # [TM, H]

    # ---- final_net: Linear -> ReLU -> LN -> Linear(H, 1) ---------------------
    f = jnp.maximum(jnp.dot(attended, w3, preferred_element_type=jnp.float32) + b3, 0.0)
    f = _layernorm(f, g3, be3)
    # Lane-dense [1, TM] store; contract on f's LAST dim (no explicit transpose).
    o_ref[...] = lax.dot_general(w4row, f, dimension_numbers=dn,
                                 preferred_element_type=jnp.float32) + b4


# ------------------------------ wrapper --------------------------------------
def attention_critic(states, actions, slab, *, tm=None):
    """states: [B, N, state_dim], actions: [B, N, action_dim] -> [B, N, 1]."""
    B, N, sd = states.shape
    ad = actions.shape[-1]
    assert sd == STATE_DIM and ad == ACTION_DIM
    M = B * N
    if tm is None:
        # Single-TC chips (v5e/v6e): one big row tile.  On v7x, once M grows,
        # prefer >=2 parallel grid steps (e.g. tm = min(M // 2, 512)) so both
        # TensorCores get work.
        tm = M if M <= 512 else 512
    assert M % tm == 0  # TODO(synk): ragged M needs pl.cdiv grid + masked tail
    xs = states.reshape(M, sd)
    xa = actions.reshape(M, ad)

    grid_spec = pltpu.PrefetchScalarGridSpec(
        num_scalar_prefetch=0,
        grid=(M // tm,),
        in_specs=[
            pl.BlockSpec((tm, sd), lambda i: (i, 0)),
            pl.BlockSpec((tm, ad), lambda i: (i, 0)),
            pl.BlockSpec((SLAB_ROWS, SLAB_COLS), lambda i: (0, 0)),
        ],
        out_specs=pl.BlockSpec((1, tm), lambda i: (0, i)),
    )
    out = pl.pallas_call(
        attention_critic_kernel,
        out_shape=jax.ShapeDtypeStruct((1, M), jnp.float32),
        grid_spec=grid_spec,
        compiler_params=pltpu.CompilerParams(dimension_semantics=("parallel",)),
    )(xs, xa, slab)
    return out.reshape(B, N, 1)


# ------------------- one-time parameter / constant packing -------------------
def _selectors():
    j = jnp.arange(WIDE)
    i = jnp.arange(HIDDEN_DIM)
    c = jnp.arange(NH2)
    # q-expand (and fold-back, used transposed): 1 iff same query-head and same dim
    rq = ((j[None, :] // HIDDEN_DIM == i[:, None] // HEAD_DIM)
          & (j[None, :] % HEAD_DIM == i[:, None] % HEAD_DIM)).astype(jnp.float32)
    # k/v tiling: replicate the full hidden vector into every query-head block
    rk = (i[:, None] == j[None, :] % HIDDEN_DIM).astype(jnp.float32)
    # segment selector: logit column c sums lanes j with j // head_dim == c
    se = (c[:, None] == j[None, :] // HEAD_DIM).astype(jnp.float32)
    # group-sum selector: 1 iff both logit columns belong to the same query head
    g = (c[:, None] // N_HEADS == c[None, :] // N_HEADS).astype(jnp.float32)
    return rq, rk, se, g


def pack_params(params):
    (w1, b1, g1, be1, w2, b2, g2, be2,
     wk, bk, wq, bq, wv, bv,
     w3, b3, g3, be3, w4, b4) = params
    H = HIDDEN_DIM
    slab = jnp.zeros((SLAB_ROWS, SLAB_COLS), jnp.float32)

    def put(s, row, block):
        blk = jnp.asarray(block, jnp.float32)
        return s.at[row:row + blk.shape[0], 0:blk.shape[1]].set(blk)

    slab = put(slab, O_W1S, w1[:STATE_DIM])
    slab = put(slab, O_W1A, w1[STATE_DIM:])
    slab = put(slab, O_W2, w2)
    slab = put(slab, O_WKQV, jnp.concatenate([wk, wq, wv], axis=1))
    slab = put(slab, O_W3, w3)
    vecs = jnp.concatenate(
        [b1, g1, be1, b2, g2, be2, bk, bq, bv, b3, g3, be3,
         w4.T, jnp.broadcast_to(b4, (1, H))], axis=0)             # [14, H]
    slab = put(slab, O_VEC, vecs)
    rq, rk, se, g = _selectors()
    slab = put(slab, O_RQ, rq)
    slab = put(slab, O_RK, rk)
    slab = put(slab, O_E, se)
    slab = put(slab, O_G, g)
    return slab


# ------------------------ deterministic parameters ----------------------------
def init_params(key):
    def lin(k, fan_in, fan_out):
        kw, kb = jax.random.split(k)
        bound = 1.0 / jnp.sqrt(jnp.float32(fan_in))
        w = jax.random.uniform(kw, (fan_in, fan_out), jnp.float32, -bound, bound)
        b = jax.random.uniform(kb, (1, fan_out), jnp.float32, -bound, bound)
        return w, b

    keys = jax.random.split(key, 7)
    w1, b1 = lin(keys[0], IN_DIM, HIDDEN_DIM)
    g1, be1 = jnp.ones((1, HIDDEN_DIM), jnp.float32), jnp.zeros((1, HIDDEN_DIM), jnp.float32)
    w2, b2 = lin(keys[1], HIDDEN_DIM, HIDDEN_DIM)
    g2, be2 = jnp.ones((1, HIDDEN_DIM), jnp.float32), jnp.zeros((1, HIDDEN_DIM), jnp.float32)
    wk, bk = lin(keys[2], HIDDEN_DIM, HIDDEN_DIM)
    wq, bq = lin(keys[3], HIDDEN_DIM, HIDDEN_DIM)
    wv, bv = lin(keys[4], HIDDEN_DIM, HIDDEN_DIM)
    w3, b3 = lin(keys[5], HIDDEN_DIM, HIDDEN_DIM)
    g3, be3 = jnp.ones((1, HIDDEN_DIM), jnp.float32), jnp.zeros((1, HIDDEN_DIM), jnp.float32)
    w4, b4 = lin(keys[6], HIDDEN_DIM, 1)
    return (w1, b1, g1, be1, w2, b2, g2, be2,
            wk, bk, wq, bq, wv, bv,
            w3, b3, g3, be3, w4, b4)


# ------------------------- pure-JAX reference ---------------------------------
def reference(states, actions, params):
    (w1, b1, g1, be1, w2, b2, g2, be2,
     wk, bk, wq, bq, wv, bv,
     w3, b3, g3, be3, w4, b4) = params
    x = jnp.concatenate([states, actions], axis=-1)
    h = jax.nn.relu(x @ w1 + b1)
    h = _layernorm(h, g1, be1)
    h = jax.nn.relu(h @ w2 + b2)
    enc = _layernorm(h, g2, be2)
    B, N, H = enc.shape
    k = (enc @ wk + bk).reshape(B, N, N_HEADS, HEAD_DIM)
    q = (enc @ wq + bq).reshape(B, N, N_HEADS, HEAD_DIM)
    v = (enc @ wv + bv).reshape(B, N, N_HEADS, HEAD_DIM)
    scores = jnp.einsum('bnhd,bnjd->bnhj', q, k) / jnp.sqrt(jnp.float32(HEAD_DIM))
    att = jax.nn.softmax(scores, axis=-1)
    attended = jnp.einsum('bnhj,bnjd->bnhd', att, v).reshape(B, N, H)
    f = jax.nn.relu(attended @ w3 + b3)
    f = _layernorm(f, g3, be3)
    return f @ w4 + b4


if __name__ == "__main__":
    key = jax.random.PRNGKey(0)
    kp, ks, ka = jax.random.split(key, 3)
    params = init_params(kp)
    slab = pack_params(params)          # one-time packing (not per forward call)
    states = jax.random.normal(ks, (BATCH, N_AGENTS, STATE_DIM), jnp.float32)
    actions = jax.random.normal(ka, (BATCH, N_AGENTS, ACTION_DIM), jnp.float32)

    fwd = jax.jit(attention_critic)
    q_vals = jax.block_until_ready(fwd(states, actions, slab))

    ref = reference(states, actions, params)
    assert q_vals.shape == (BATCH, N_AGENTS, 1)
    assert jnp.allclose(q_vals, ref, rtol=1e-4, atol=1e-4)
    print("KERNEL_OK")
</pallas_src>

<mosaic_0001>
module attributes {stable_mosaic.version = 11 : i64} {
  func.func @attention_critic_kernel(%arg0: i32, %arg1: memref<16x12xf32, #tpu.memory_space<vmem>>, %arg2: memref<16x4xf32, #tpu.memory_space<vmem>>, %arg3: memref<232x128xf32, #tpu.memory_space<vmem>>, %arg4: memref<1x16xf32, #tpu.memory_space<vmem>>) attributes {dimension_semantics = [#tpu.dimension_semantics<parallel>], iteration_bounds = array<i64: 1>, scalar_prefetch = 0 : i64, scratch_operands = 0 : i64, tpu.core_type = #tpu.core_type<tc>, window_params = [{transform_indices = @transform_0, window_bounds = array<i64: 16, 12>}, {transform_indices = @transform_1, window_bounds = array<i64: 16, 4>}, {pipeline_mode = #tpu.pipeline_mode<synchronous>, transform_indices = @transform_2, window_bounds = array<i64: 232, 128>}, {transform_indices = @transform_3, window_bounds = array<i64: 1, 16>}]} {
    %c0 = arith.constant 0 : index
    %c0_0 = arith.constant 0 : index
    %0 = vector.load %arg1[%c0, %c0_0] : memref<16x12xf32, #tpu.memory_space<vmem>>, vector<16x12xf32>
    %c0_1 = arith.constant 0 : index
    %c0_2 = arith.constant 0 : index
    %1 = vector.load %arg2[%c0_1, %c0_2] : memref<16x4xf32, #tpu.memory_space<vmem>>, vector<16x4xf32>
    %c0_3 = arith.constant 0 : index
    %c0_4 = arith.constant 0 : index
    %2 = vector.load %arg3[%c0_3, %c0_4] : memref<232x128xf32, #tpu.memory_space<vmem>>, vector<12x32xf32>
    %c16 = arith.constant 16 : index
    %c0_5 = arith.constant 0 : index
    %3 = vector.load %arg3[%c16, %c0_5] : memref<232x128xf32, #tpu.memory_space<vmem>>, vector<4x32xf32>
    %c24 = arith.constant 24 : index
    %c0_6 = arith.constant 0 : index
    %4 = vector.load %arg3[%c24, %c0_6] : memref<232x128xf32, #tpu.memory_space<vmem>>, vector<32x32xf32>
    %c56 = arith.constant 56 : index
    %c0_7 = arith.constant 0 : index
    %5 = vector.load %arg3[%c56, %c0_7] : memref<232x128xf32, #tpu.memory_space<vmem>>, vector<32x96xf32>
    %c88 = arith.constant 88 : index
    %c0_8 = arith.constant 0 : index
    %6 = vector.load %arg3[%c88, %c0_8] : memref<232x128xf32, #tpu.memory_space<vmem>>, vector<32x32xf32>
    %c120 = arith.constant 120 : index
    %c0_9 = arith.constant 0 : index
    %7 = vector.load %arg3[%c120, %c0_9] : memref<232x128xf32, #tpu.memory_space<vmem>>, vector<14x32xf32>
    %c136 = arith.constant 136 : index
    %c0_10 = arith.constant 0 : index
    %8 = vector.load %arg3[%c136, %c0_10] : memref<232x128xf32, #tpu.memory_space<vmem>>, vector<32x128xf32>
    %c168 = arith.constant 168 : index
    %c0_11 = arith.constant 0 : index
    %9 = vector.load %arg3[%c168, %c0_11] : memref<232x128xf32, #tpu.memory_space<vmem>>, vector<32x128xf32>
    %c200 = arith.constant 200 : index
    %c0_12 = arith.constant 0 : index
    %10 = vector.load %arg3[%c200, %c0_12] : memref<232x128xf32, #tpu.memory_space<vmem>>, vector<16x128xf32>
    %c216 = arith.constant 216 : index
    %c0_13 = arith.constant 0 : index
    %11 = vector.load %arg3[%c216, %c0_13] : memref<232x128xf32, #tpu.memory_space<vmem>>, vector<16x16xf32>
    %12 = vector.extract_strided_slice %7 {offsets = [0, 0], sizes = [1, 32], strides = [1, 1]} : vector<14x32xf32> to vector<1x32xf32>
    %13 = vector.extract_strided_slice %7 {offsets = [1, 0], sizes = [1, 32], strides = [1, 1]} : vector<14x32xf32> to vector<1x32xf32>
    %14 = vector.extract_strided_slice %7 {offsets = [2, 0], sizes = [1, 32], strides = [1, 1]} : vector<14x32xf32> to vector<1x32xf32>
    %15 = vector.extract_strided_slice %7 {offsets = [3, 0], sizes = [1, 32], strides = [1, 1]} : vector<14x32xf32> to vector<1x32xf32>
    %16 = vector.extract_strided_slice %7 {offsets = [4, 0], sizes = [1, 32], strides = [1, 1]} : vector<14x32xf32> to vector<1x32xf32>
    %17 = vector.extract_strided_slice %7 {offsets = [5, 0], sizes = [1, 32], strides = [1, 1]} : vector<14x32xf32> to vector<1x32xf32>
    %18 = vector.extract_strided_slice %7 {offsets = [6, 0], sizes = [1, 32], strides = [1, 1]} : vector<14x32xf32> to vector<1x32xf32>
    %19 = vector.extract_strided_slice %7 {offsets = [7, 0], sizes = [1, 32], strides = [1, 1]} : vector<14x32xf32> to vector<1x32xf32>
    %20 = vector.extract_strided_slice %7 {offsets = [8, 0], sizes = [1, 32], strides = [1, 1]} : vector<14x32xf32> to vector<1x32xf32>
    %21 = vector.extract_strided_slice %7 {offsets = [9, 0], sizes = [1, 32], strides = [1, 1]} : vector<14x32xf32> to vector<1x32xf32>
    %22 = vector.extract_strided_slice %7 {offsets = [10, 0], sizes = [1, 32], strides = [1, 1]} : vector<14x32xf32> to vector<1x32xf32>
    %23 = vector.extract_strided_slice %7 {offsets = [11, 0], sizes = [1, 32], strides = [1, 1]} : vector<14x32xf32> to vector<1x32xf32>
    %24 = vector.extract_strided_slice %7 {offsets = [12, 0], sizes = [1, 32], strides = [1, 1]} : vector<14x32xf32> to vector<1x32xf32>
    %25 = vector.extract_strided_slice %7 {offsets = [13, 0], sizes = [1, 1], strides = [1, 1]} : vector<14x32xf32> to vector<1x1xf32>
    %cst = arith.constant dense<0.000000e+00> : vector<16x32xf32>
    %26 = tpu.matmul %0, %2, %cst {dimension_numbers = #tpu.dot_dimension_numbers<[1], [0], [0], [1], [0, 0, 1, 1], [], []>} : vector<16x12xf32>, vector<12x32xf32>, vector<16x32xf32> -> vector<16x32xf32>
    %cst_14 = arith.constant dense<0.000000e+00> : vector<16x32xf32>
    %27 = tpu.matmul %1, %3, %cst_14 {dimension_numbers = #tpu.dot_dimension_numbers<[1], [0], [0], [1], [0, 0, 1, 1], [], []>} : vector<16x4xf32>, vector<4x32xf32>, vector<16x32xf32> -> vector<16x32xf32>
    %28 = arith.addf %26, %27 : vector<16x32xf32>
    %29 = vector.broadcast %12 : vector<1x32xf32> to vector<16x32xf32>
    %30 = arith.addf %28, %29 : vector<16x32xf32>
    %cst_15 = arith.constant 0.000000e+00 : f32
    %31 = vector.broadcast %cst_15 : f32 to vector<16x32xf32>
    %32 = arith.maximumf %30, %31 : vector<16x32xf32>
    %cst_16 = arith.constant dense<0.000000e+00> : vector<16xf32>
    %33 = vector.multi_reduction <add>, %32, %cst_16 [1] : vector<16x32xf32> to vector<16xf32>
    %34 = vector.shape_cast %33 : vector<16xf32> to vector<16x1xf32>
    %cst_17 = arith.constant 3.200000e+01 : f32
    %35 = vector.broadcast %cst_17 : f32 to vector<16x1xf32>
    %36 = arith.divf %34, %35 : vector<16x1xf32>
    %37 = vector.broadcast %36 : vector<16x1xf32> to vector<16x32xf32>
    %38 = arith.subf %32, %37 : vector<16x32xf32>
    %39 = arith.mulf %38, %38 : vector<16x32xf32>
    %cst_18 = arith.constant dense<0.000000e+00> : vector<16xf32>
    %40 = vector.multi_reduction <add>, %39, %cst_18 [1] : vector<16x32xf32> to vector<16xf32>
    %41 = vector.shape_cast %40 : vector<16xf32> to vector<16x1xf32>
    %cst_19 = arith.constant 3.200000e+01 : f32
    %42 = vector.broadcast %cst_19 : f32 to vector<16x1xf32>
    %43 = arith.divf %41, %42 : vector<16x1xf32>
    %44 = vector.broadcast %36 : vector<16x1xf32> to vector<16x32xf32>
    %45 = arith.subf %32, %44 : vector<16x32xf32>
    %cst_20 = arith.constant 9.99999974E-6 : f32
    %46 = vector.broadcast %cst_20 : f32 to vector<16x1xf32>
    %47 = arith.addf %43, %46 : vector<16x1xf32>
    %48 = math.rsqrt %47 : vector<16x1xf32>
    %49 = vector.broadcast %48 : vector<16x1xf32> to vector<16x32xf32>
    %50 = arith.mulf %45, %49 : vector<16x32xf32>
    %51 = vector.broadcast %13 : vector<1x32xf32> to vector<16x32xf32>
    %52 = arith.mulf %50, %51 : vector<16x32xf32>
    %53 = vector.broadcast %14 : vector<1x32xf32> to vector<16x32xf32>
    %54 = arith.addf %52, %53 : vector<16x32xf32>
    %cst_21 = arith.constant dense<0.000000e+00> : vector<16x32xf32>
    %55 = tpu.matmul %54, %4, %cst_21 {dimension_numbers = #tpu.dot_dimension_numbers<[1], [0], [0], [1], [0, 0, 1, 1], [], []>} : vector<16x32xf32>, vector<32x32xf32>, vector<16x32xf32> -> vector<16x32xf32>
    %56 = vector.broadcast %15 : vector<1x32xf32> to vector<16x32xf32>
    %57 = arith.addf %55, %56 : vector<16x32xf32>
    %cst_22 = arith.constant 0.000000e+00 : f32
    %58 = vector.broadcast %cst_22 : f32 to vector<16x32xf32>
    %59 = arith.maximumf %57, %58 : vector<16x32xf32>
    %cst_23 = arith.constant dense<0.000000e+00> : vector<16xf32>
    %60 = vector.multi_reduction <add>, %59, %cst_23 [1] : vector<16x32xf32> to vector<16xf32>
    %61 = vector.shape_cast %60 : vector<16xf32> to vector<16x1xf32>
    %cst_24 = arith.constant 3.200000e+01 : f32
    %62 = vector.broadcast %cst_24 : f32 to vector<16x1xf32>
    %63 = arith.divf %61, %62 : vector<16x1xf32>
    %64 = vector.broadcast %63 : vector<16x1xf32> to vector<16x32xf32>
    %65 = arith.subf %59, %64 : vector<16x32xf32>
    %66 = arith.mulf %65, %65 : vector<16x32xf32>
    %cst_25 = arith.constant dense<0.000000e+00> : vector<16xf32>
    %67 = vector.multi_reduction <add>, %66, %cst_25 [1] : vector<16x32xf32> to vector<16xf32>
    %68 = vector.shape_cast %67 : vector<16xf32> to vector<16x1xf32>
    %cst_26 = arith.constant 3.200000e+01 : f32
    %69 = vector.broadcast %cst_26 : f32 to vector<16x1xf32>
    %70 = arith.divf %68, %69 : vector<16x1xf32>
    %71 = vector.broadcast %63 : vector<16x1xf32> to vector<16x32xf32>
    %72 = arith.subf %59, %71 : vector<16x32xf32>
    %cst_27 = arith.constant 9.99999974E-6 : f32
    %73 = vector.broadcast %cst_27 : f32 to vector<16x1xf32>
    %74 = arith.addf %70, %73 : vector<16x1xf32>
    %75 = math.rsqrt %74 : vector<16x1xf32>
    %76 = vector.broadcast %75 : vector<16x1xf32> to vector<16x32xf32>
    %77 = arith.mulf %72, %76 : vector<16x32xf32>
    %78 = vector.broadcast %16 : vector<1x32xf32> to vector<16x32xf32>
    %79 = arith.mulf %77, %78 : vector<16x32xf32>
    %80 = vector.broadcast %17 : vector<1x32xf32> to vector<16x32xf32>
    %81 = arith.addf %79, %80 : vector<16x32xf32>
    %cst_28 = arith.constant dense<0.000000e+00> : vector<16x96xf32>
    %82 = tpu.matmul %81, %5, %cst_28 {dimension_numbers = #tpu.dot_dimension_numbers<[1], [0], [0], [1], [0, 0, 1, 1], [], []>} : vector<16x32xf32>, vector<32x96xf32>, vector<16x96xf32> -> vector<16x96xf32>
    %83 = vector.extract_strided_slice %82 {offsets = [0, 0], sizes = [16, 32], strides = [1, 1]} : vector<16x96xf32> to vector<16x32xf32>
    %84 = vector.broadcast %18 : vector<1x32xf32> to vector<16x32xf32>
    %85 = arith.addf %83, %84 : vector<16x32xf32>
    %86 = vector.extract_strided_slice %82 {offsets = [0, 32], sizes = [16, 32], strides = [1, 1]} : vector<16x96xf32> to vector<16x32xf32>
    %87 = vector.broadcast %19 : vector<1x32xf32> to vector<16x32xf32>
    %88 = arith.addf %86, %87 : vector<16x32xf32>
    %89 = vector.extract_strided_slice %82 {offsets = [0, 64], sizes = [16, 32], strides = [1, 1]} : vector<16x96xf32> to vector<16x32xf32>
    %90 = vector.broadcast %20 : vector<1x32xf32> to vector<16x32xf32>
    %91 = arith.addf %89, %90 : vector<16x32xf32>
    %cst_29 = arith.constant dense<0.000000e+00> : vector<16x128xf32>
    %92 = tpu.matmul %88, %8, %cst_29 {dimension_numbers = #tpu.dot_dimension_numbers<[1], [0], [0], [1], [0, 0, 1, 1], [], []>} : vector<16x32xf32>, vector<32x128xf32>, vector<16x128xf32> -> vector<16x128xf32>
    %cst_30 = arith.constant dense<0.000000e+00> : vector<16x128xf32>
    %93 = tpu.matmul %85, %9, %cst_30 {dimension_numbers = #tpu.dot_dimension_numbers<[1], [0], [0], [1], [0, 0, 1, 1], [], []>} : vector<16x32xf32>, vector<32x128xf32>, vector<16x128xf32> -> vector<16x128xf32>
    %cst_31 = arith.constant dense<0.000000e+00> : vector<16x128xf32>
    %94 = tpu.matmul %91, %9, %cst_31 {dimension_numbers = #tpu.dot_dimension_numbers<[1], [0], [0], [1], [0, 0, 1, 1], [], []>} : vector<16x32xf32>, vector<32x128xf32>, vector<16x128xf32> -> vector<16x128xf32>
    %95 = arith.mulf %92, %93 : vector<16x128xf32>
    %cst_32 = arith.constant dense<0.000000e+00> : vector<16x16xf32>
    %96 = tpu.matmul %95, %10, %cst_32 {dimension_numbers = #tpu.dot_dimension_numbers<[1], [1], [0], [0], [0, 0, 1, 0], [], []>} : vector<16x128xf32>, vector<16x128xf32>, vector<16x16xf32> -> vector<16x16xf32>
    %cst_33 = arith.constant 0.353553385 : f32
    %97 = vector.broadcast %cst_33 : f32 to vector<16x16xf32>
    %98 = arith.mulf %96, %97 : vector<16x16xf32>
    %cst_34 = arith.constant dense<0xFF800000> : vector<16xf32>
    %99 = vector.multi_reduction <maximumf>, %98, %cst_34 [1] : vector<16x16xf32> to vector<16xf32>
    %100 = vector.shape_cast %99 : vector<16xf32> to vector<16x1xf32>
    %101 = vector.broadcast %100 : vector<16x1xf32> to vector<16x16xf32>
    %102 = arith.subf %98, %101 : vector<16x16xf32>
    %103 = math.exp %102 : vector<16x16xf32>
    %cst_35 = arith.constant dense<0.000000e+00> : vector<16x16xf32>
    %104 = tpu.matmul %103, %11, %cst_35 {dimension_numbers = #tpu.dot_dimension_numbers<[1], [0], [0], [1], [0, 0, 1, 1], [], []>} : vector<16x16xf32>, vector<16x16xf32>, vector<16x16xf32> -> vector<16x16xf32>
    %105 = arith.divf %103, %104 : vector<16x16xf32>
    %cst_36 = arith.constant dense<0.000000e+00> : vector<16x128xf32>
    %106 = tpu.matmul %105, %10, %cst_36 {dimension_numbers = #tpu.dot_dimension_numbers<[1], [0], [0], [1], [0, 0, 1, 1], [], []>} : vector<16x16xf32>, vector<16x128xf32>, vector<16x128xf32> -> vector<16x128xf32>
    %107 = arith.mulf %106, %94 : vector<16x128xf32>
    %cst_37 = arith.constant dense<0.000000e+00> : vector<16x32xf32>
    %108 = tpu.matmul %107, %8, %cst_37 {dimension_numbers = #tpu.dot_dimension_numbers<[1], [1], [0], [0], [0, 0, 1, 0], [], []>} : vector<16x128xf32>, vector<32x128xf32>, vector<16x32xf32> -> vector<16x32xf32>
    %cst_38 = arith.constant dense<0.000000e+00> : vector<16x32xf32>
    %109 = tpu.matmul %108, %6, %cst_38 {dimension_numbers = #tpu.dot_dimension_numbers<[1], [0], [0], [1], [0, 0, 1, 1], [], []>} : vector<16x32xf32>, vector<32x32xf32>, vector<16x32xf32> -> vector<16x32xf32>
    %110 = vector.broadcast %21 : vector<1x32xf32> to vector<16x32xf32>
    %111 = arith.addf %109, %110 : vector<16x32xf32>
    %cst_39 = arith.constant 0.000000e+00 : f32
    %112 = vector.broadcast %cst_39 : f32 to vector<16x32xf32>
    %113 = arith.maximumf %111, %112 : vector<16x32xf32>
    %cst_40 = arith.constant dense<0.000000e+00> : vector<16xf32>
    %114 = vector.multi_reduction <add>, %113, %cst_40 [1] : vector<16x32xf32> to vector<16xf32>
    %115 = vector.shape_cast %114 : vector<16xf32> to vector<16x1xf32>
    %cst_41 = arith.constant 3.200000e+01 : f32
    %116 = vector.broadcast %cst_41 : f32 to vector<16x1xf32>
    %117 = arith.divf %115, %116 : vector<16x1xf32>
    %118 = vector.broadcast %117 : vector<16x1xf32> to vector<16x32xf32>
    %119 = arith.subf %113, %118 : vector<16x32xf32>
    %120 = arith.mulf %119, %119 : vector<16x32xf32>
    %cst_42 = arith.constant dense<0.000000e+00> : vector<16xf32>
    %121 = vector.multi_reduction <add>, %120, %cst_42 [1] : vector<16x32xf32> to vector<16xf32>
    %122 = vector.shape_cast %121 : vector<16xf32> to vector<16x1xf32>
    %cst_43 = arith.constant 3.200000e+01 : f32
    %123 = vector.broadcast %cst_43 : f32 to vector<16x1xf32>
    %124 = arith.divf %122, %123 : vector<16x1xf32>
    %125 = vector.broadcast %117 : vector<16x1xf32> to vector<16x32xf32>
    %126 = arith.subf %113, %125 : vector<16x32xf32>
    %cst_44 = arith.constant 9.99999974E-6 : f32
    %127 = vector.broadcast %cst_44 : f32 to vector<16x1xf32>
    %128 = arith.addf %124, %127 : vector<16x1xf32>
    %129 = math.rsqrt %128 : vector<16x1xf32>
    %130 = vector.broadcast %129 : vector<16x1xf32> to vector<16x32xf32>
    %131 = arith.mulf %126, %130 : vector<16x32xf32>
    %132 = vector.broadcast %22 : vector<1x32xf32> to vector<16x32xf32>
    %133 = arith.mulf %131, %132 : vector<16x32xf32>
    %134 = vector.broadcast %23 : vector<1x32xf32> to vector<16x32xf32>
    %135 = arith.addf %133, %134 : vector<16x32xf32>
    %cst_45 = arith.constant dense<0.000000e+00> : vector<1x16xf32>
    %136 = tpu.matmul %24, %135, %cst_45 {dimension_numbers = #tpu.dot_dimension_numbers<[1], [1], [0], [0], [0, 0, 1, 0], [], []>} : vector<1x32xf32>, vector<16x32xf32>, vector<1x16xf32> -> vector<1x16xf32>
    %137 = vector.broadcast %25 : vector<1x1xf32> to vector<1x16xf32>
    %138 = arith.addf %136, %137 : vector<1x16xf32>
    %c0_46 = arith.constant 0 : index
    %c0_47 = arith.constant 0 : index
    %139 = vector.load %arg4[%c0_46, %c0_47] : memref<1x16xf32, #tpu.memory_space<vmem>>, vector<1x16xf32>
    tpu.vector_store %arg4[%c0_46, %c0_47], %138 {strides = array<i32>} : memref<1x16xf32, #tpu.memory_space<vmem>>, vector<1x16xf32>,
    return
  }
  func.func @transform_0(%arg0: i32) -> (i32, i32) {
    %c0_i32 = arith.constant 0 : i32
    %c0_i32_0 = arith.constant 0 : i32
    return %arg0, %c0_i32 : i32, i32
  }
  func.func @transform_1(%arg0: i32) -> (i32, i32) {
    %c0_i32 = arith.constant 0 : i32
    %c0_i32_0 = arith.constant 0 : i32
    return %arg0, %c0_i32 : i32, i32
  }
  func.func @transform_2(%arg0: i32) -> (i32, i32) {
    %c0_i32 = arith.constant 0 : i32
    %c0_i32_0 = arith.constant 0 : i32
    %c0_i32_1 = arith.constant 0 : i32
    return %c0_i32, %c0_i32_0 : i32, i32
  }
  func.func @transform_3(%arg0: i32) -> (i32, i32) {
    %c0_i32 = arith.constant 0 : i32
    %c0_i32_0 = arith.constant 0 : i32
    return %c0_i32, %arg0 : i32, i32
  }
}

</mosaic_0001>

<bundles_post_ra>
// kernel: attention_critic.1
= control target key start
LH: loop header
LB: loop body
LE: loop exit
PB: predicated region body
PF: predicated region fallthrough
CT: control target
= control target key end

     0   :  { %8 = vsyncpa [#allocation3], 0  ;;  %s1657_s12 = smov [#allocation2]   ;;  %s1801_s0 = inlined_call_operand.vmem [shape: f32[16,12], index: 0, kind: input, shape index: {}]   ;;  %s1802_s1 = inlined_call_operand.vmem [shape: f32[16,4], index: 1, kind: input, shape index: {}]   ;;  %s1803_s2 = inlined_call_operand.hbm [shape: f32[232,128], index: 2, kind: input, shape index: {}]   ;;  %s1804_s3 = inlined_call_operand.vmem [shape: f32[1,16], index: 3, kind: output, shape index: {}]  }
   0x1   :  { %s18_s13 = sshll.u32 %s1657_s12, 4  ;;  %s1633_s16 = scalar_lea.hbm %s1803_s2, 3712  ;;  %s19_s13 = int_to_ptr.vmem [resolvable:$true] %s18_s13 }
   0x2   :  { %p1634_p0 = scmp.ne.s32.totalorder %s1803_s2, %s1633_s16  ;;  %p1637_p1 = scmp.lt.u32.totalorder %s1633_s16, %s1803_s2 }
   0x4   :  { %p1639_p2 = pnand %p1637_p1, %p1634_p0 }
   0x6   :  { %1642 = shalt.err (!%p1639_p2)
}
   0x7   :  { %s1643_s21 = scalar_lea.vmem %s19_s13, 3712  ;;  %p1648_p4 = scmp.lt.s32.totalorder %s19_s13, %s19_s13 }
   0x8   :  { %p1644_p3 = scmp.ne.s32.totalorder %s19_s13, %s1643_s21  ;;  %p1649_p5 = scmp.lt.s32.totalorder %s1643_s21, %s1643_s21 }
   0xa   :  { %p1650_p6 = por %p1649_p5, %p1648_p4 }
   0xc   :  { %p1651_p7 = pnand %p1650_p6, %p1644_p3 }
   0xe   :  { %1654 = shalt.err (!%p1651_p7)
}
   0xf   :  { %s1658_s22 = smov 128   ;;  %s1659_s23 = smov 8  }
  0x10   :  { %24 = dma.hbm_to_vmem [thread:$0]  %s1803_s2, 3712, %s19_s13, [#allocation3], %s1658_s22, %s1658_s22, %s1659_s23  }
  0x11   :  { %1655 = dma.done.wait [#allocation3], 3712  }
  0x12   :  { %1656 = vsyncadd [#allocation3], 4294963584  ;;  %vm68_vm0 = vcmask 1043456   ;;  %vm61_vm1 = vcmask 31744   ;;  %vm1660_vm2 = vmmov 1   ;;  %v30_v1 = vld [vmem:[%s1802_s1] sm:$0xff]  ;;  %v232_v8 = vlaneseq }
  0x13   :  { %vm1522_vm3 = vmpackc.low %vm68_vm0, %vm1660_vm2  ;;  %v34_v0 = vld [vmem:[#allocation2 + $0x10] sm:$0xf]  ;;  %v31_v2 = vld [vmem:[%s1802_s1 + $0x8] sm:$0xff]  ;;  %1406 = vmatprep.mubr.msk.f32.mxu0 %vm61_vm1, %v30_v1  ;;  %vm147_vm4 = vcmask 97280   ;;  %vm240_vm5 = vcmask 261120   ;;  %s1662_s1 = smov 96  }
  0x14   :  { %1404 = vmatprep.subr.msk.mxu0 %vm68_vm0, %v34_v0  ;;  %v32_v3 = vld [vmem:[#allocation2] sm:$0xff]  ;;  %v33_v4 = vld [vmem:[#allocation2 + $0x8] sm:$0xf]  ;;  %v1712_v9 = vshrl.u32 %v232_v8, 7  ;;  %v1715_v11 = vld [vmem:[#allocation2 + $0x78] sm:$0xff]  ;;  %s1663_s6 = smov 64  }
  0x15   :  { %v28_v5 = vld [vmem:[%s1801_s0] sm:$0xff]  ;;  %1405 = vmatpush3.msk.msra.mxu0 %vm68_vm0, %v34_v0  ;;  %v1521_v6 = vpack.c.bf16 %v33_v4, %v32_v3  ;;  %v29_v7 = vld [vmem:[%s1801_s0 + $0x8] sm:$0xff]  ;;  %v35_v31 = vld [vmem:[#allocation2 + $0x18] sm:$0xff]  ;;  %s1661_s0 = smov 32   ;;  %vm842_vm6 = vcmask 130048   ;;  %vm1665_vm7 = vmmov 0  }
  0x16   :  { %1407 = vmatmul.mubr.msk.f32.vlgmr.msra.gmra.mrb[0].mxu0 %vm61_vm1, %v31_v2  ;;  %v234_v10 = vsub.s32 0, %v1712_v9  ;;  %v36_v32 = vld [vmem:[#allocation2 + $0x20] sm:$0xff]  ;;  %v37_v33 = vld [vmem:[#allocation2 + $0x28] sm:$0xff]  ;;  %v38_v35 = vld [vmem:[#allocation2 + $0x30] sm:$0xff]  ;;  %v270_v43 = vsub.s32 1, %v1712_v9  ;;  %v276_v44 = vsub.s32 2, %v1712_v9 }
  0x17   :  { %1523 = vmatprep.subr.msk.bf16.mxu0 %vm1522_vm3, %v1521_v6  ;;  %1413 = vmatprep.mubr.msk.f32.mxu0 %vm147_vm4, %v28_v5  ;;  %v1527_v34 = vpack.c.bf16 %v36_v32, %v35_v31  ;;  %v1531_v36 = vpack.c.bf16 %v38_v35, %v37_v33  ;;  %v282_v55 = vsub.s32 3, %v1712_v9  ;;  %v395_v31 = vsub.s32 4, %v1712_v9  ;;  %vm1597_vm8 = vmpackc.low %vm240_vm5, %vm240_vm5 }
  0x18   :  { %1526 = vmatpush3.bf16.msk.msra.mxu0 %vm1522_vm3, %v1521_v6  ;;  %v235_v12 = vrot.slane %v1715_v11, %v234_v10  ;;  %v271_v45 = vrot.slane %v1715_v11, %v270_v43  ;;  %v277_v48 = vrot.slane %v1715_v11, %v276_v44  ;;  %v401_v32 = vsub.s32 5, %v1712_v9 }
  0x19   :  { %1528 = vmatprep.subr.bf16.mxu1 %v1527_v34  ;;  %v283_v56 = vrot.slane %v1715_v11, %v282_v55  ;;  %v396_v33 = vrot.slane %v1715_v11, %v395_v31  ;;  %vm1308_vm9 = vcmask 122880  }
  0x1a   :  { %1530 = vmatpush3.bf16.msra.mxu1 %v1527_v34 }
  0x1b   :  { %1532 = vmatprep.subr.bf16.mxu1 %v1531_v36 }
  0x1e   :  { %1414 = vmatmul.mubr.msk.f32.vlgmr.msra.gmra.mrb[0].mxu0 %vm147_vm4, %v29_v7  ;;  %1534 = vmatpush3.bf16.msra.mxu1 %v1531_v36 }
  0xf1   :  { %v1415_v13 = vpop.f32.mrb[0].mxu0 }
  0xf2   :  { %v223_v14 = vpop.f32.mrb[1].mxu0  ;;  %v237_v15 = vadd.f32 %v1415_v13, %v235_v12 }
  0xf3   :  { %v236_v16 = vadd.f32 %v235_v12, %v223_v14  ;;  %v39_v14 = vld [vmem:[#allocation2 + $0x38] sm:$0xff] }
  0xf4   :  { %v239_v18 = vmax.f32 %v237_v15, 0.0  ;;  %v40_v15 = vld [vmem:[#allocation2 + $0x40] sm:$0xff] }
  0xf5   :  { %v238_v17 = vmax.f32 %v236_v16, 0.0  ;;  %v1535_v16 = vpack.c.bf16 %v40_v15, %v39_v14 }
  0xf6   :  { %v244_v20 = vsel %vm240_vm5, %v239_v18, 0.0 }
  0xf7   :  { %v241_v19 = vsel %vm240_vm5, %v238_v17, 0.0  ;;  %1536 = vmatprep.subr.bf16.mxu0 %v1535_v16 }
  0xf8   :  { %242 = vadd.xlane.f32.xlu0 %v241_v19  ;;  %1538 = vmatpush3.bf16.msra.mxu0 %v1535_v16 }
  0xfc   :  { %245 = vadd.xlane.f32.xlu0 %v244_v20  ;;  %v494_v20 = vsub.s32 7, %v1712_v9 }
 0x185   :  { %v243_v21 = vpop.xlane.xlu0 %242 }
 0x186   :  { %v248_v22 = vmul.f32 0.03125, %v243_v21  ;;  %v53_v21 = vld [vmem:[#allocation2 + $0xa8] sm:$0xff] }
 0x188   :  { %v250_v23 = vsub.f32 %v238_v17, %v248_v22  ;;  %v41_v17 = vld [vmem:[#allocation2 + $0x48] sm:$0xff]  ;;  %v54_v22 = vld [vmem:[#allocation2 + $0xb0] sm:$0xff] }
 0x189   :  { %v246_v24 = vpop.xlane.xlu0 %245 }
 0x18a   :  { %v249_v25 = vmul.f32 0.03125, %v246_v24  ;;  %v252_v26 = vmul.f32 %v250_v23, %v250_v23  ;;  %v495_v24 = vrot.slane %v1715_v11, %v494_v20 }
 0x18c   :  { %v251_v27 = vsub.f32 %v239_v18, %v249_v25  ;;  %v254_v28 = vsel %vm240_vm5, %v252_v26, 0.0  ;;  %v42_v18 = vld [vmem:[#allocation2 + $0x50] sm:$0xff] }
 0x18d   :  { %255 = vadd.xlane.f32.xlu1 %v254_v28  ;;  %v1539_v19 = vpack.c.bf16 %v42_v18, %v41_v17 }
 0x18e   :  { %v253_v29 = vmul.f32 %v251_v27, %v251_v27 }
 0x18f   :  { %1540 = vmatprep.subr.bf16.mxu0 %v1539_v19 }
 0x190   :  { %v257_v30 = vsel %vm240_vm5, %v253_v29, 0.0  ;;  %1542 = vmatpush3.bf16.msra.mxu0 %v1539_v19 }
 0x191   :  { %258 = vadd.xlane.f32.xlu1 %v257_v30 }
 0x21a   :  { %v256_v37 = vpop.xlane.xlu1 %255 }
 0x21b   :  { %v260_v38 = vmul.f32 0.03125, %v256_v37 }
 0x21d   :  { %v262_v39 = vadd.f32 1e-05, %v260_v38  ;;  %v402_v38 = vrot.slane %v1715_v11, %v401_v32 }
 0x21e   :  { %v259_v40 = vpop.xlane.xlu1 %258 }
 0x21f   :  { %1613 = vrsqrt.f32 %v262_v39  ;;  %v261_v41 = vmul.f32 0.03125, %v259_v40 }
 0x221   :  { %v263_v42 = vadd.f32 1e-05, %v261_v41 }
 0x223   :  { %1615 = vrsqrt.f32 %v263_v42 }
 0x229   :  { %v1614_v46 = vpop.eup %1613 }
 0x22a   :  { %v266_v47 = vmul.f32 %v1614_v46, %v250_v23  ;;  %v1743_v23 = vpack.c.bf16 %v54_v22, %v53_v21  ;;  %v56_v46 = vld [vmem:[#allocation2 + $0xc0] sm:$0xff]  ;;  %v59_v22 = vld [vmem:[#allocation2 + $0xd8] sm:$0xff] }
 0x22c   :  { %v272_v49 = vmul.f32 %v271_v45, %v266_v47  ;;  %1552 = vmatprep.subr.bf16.mxu0 %v1743_v23 }
 0x22d   :  { %v1616_v50 = vpop.eup %1615 }
 0x22e   :  { %v267_v51 = vmul.f32 %v1616_v50, %v251_v27  ;;  %v278_v52 = vadd.f32 %v277_v48, %v272_v49  ;;  %v50_v49 = vld [vmem:[#allocation2 + $0x90] sm:$0xff] }
 0x230   :  { %v273_v53 = vmul.f32 %v271_v45, %v267_v51  ;;  %1424 = vmatprep.mubr.msk.f32.mxu1 %vm240_vm5, %v278_v52  ;;  %v55_v45 = vld [vmem:[#allocation2 + $0xb8] sm:$0xff]  ;;  %v52_v52 = vld [vmem:[#allocation2 + $0xa0] sm:$0xff] }
 0x231   :  { %v1555_v47 = vpack.c.bf16 %v56_v46, %v55_v45  ;;  %v51_v51 = vld [vmem:[#allocation2 + $0x98] sm:$0xff] }
 0x232   :  { %v279_v54 = vadd.f32 %v277_v48, %v273_v53  ;;  %v49_v48 = vld [vmem:[#allocation2 + $0x88] sm:$0xff]  ;;  %v1547_v53 = vpack.c.bf16 %v52_v52, %v51_v51  ;;  %v43_v46 = vld [vmem:[#allocation2 + $0x58] sm:$0xff] }
 0x233   :  { %v1543_v50 = vpack.c.bf16 %v50_v49, %v49_v48  ;;  %v45_v48 = vld [vmem:[#allocation2 + $0x68] sm:$0xff] }
 0x234   :  { %1425 = vmatmul.mubr.msk.f32.vlgmr.msra.gmra.mrb[0].mxu1 %vm240_vm5, %v279_v54  ;;  %v488_v54 = vsub.s32 6, %v1712_v9 }
 0x235   :  { %1544 = vmatprep.subr.bf16.mxu1 %v1543_v50 }
 0x236   :  { %1546 = vmatpush3.bf16.msra.mxu1 %v1543_v50 }
 0x237   :  { %1548 = vmatprep.subr.bf16.mxu1 %v1547_v53 }
 0x23a   :  { %1550 = vmatpush3.bf16.msra.mxu1 %v1547_v53 }
 0x23b   :  { %1560 = vmatprep.subr.bf16.mxu1 %v1743_v23 }
 0x307   :  { %v1426_v57 = vpop.f32.mrb[0].mxu1 }
 0x308   :  { %v362_v58 = vadd.f32 %v1426_v57, %v283_v56  ;;  %v356_v59 = vpop.f32.mrb[1].mxu1 }
 0x309   :  { %v357_v60 = vadd.f32 %v356_v59, %v283_v56  ;;  %v489_v56 = vrot.slane %v1715_v11, %v488_v54 }
 0x30a   :  { %v366_v61 = vmax.f32 %v362_v58, 0.0 }
 0x30b   :  { %v365_v62 = vmax.f32 %v357_v60, 0.0 }
 0x30c   :  { %v370_v63 = vsel %vm240_vm5, %v366_v61, 0.0 }
 0x30d   :  { %371 = vadd.xlane.f32.xlu1 %v370_v63  ;;  %v367_v0 = vsel %vm240_vm5, %v365_v62, 0.0  ;;  %v1758_v63 = vld [vmem:[#allocation2 + $0x80] sm:$0x3f] }
 0x30e   :  { %368 = vadd.xlane.f32.xlu0 %v367_v0  ;;  %v505_v11 = vrot.slane %v1758_v63, %v234_v10 }
 0x39a   :  { %v372_v1 = vpop.xlane.xlu1 %371 }
 0x39b   :  { %v374_v2 = vmul.f32 0.03125, %v372_v1  ;;  %v369_v3 = vpop.xlane.xlu0 %368  ;;  %v57_v1 = vld [vmem:[#allocation2 + $0xc8] sm:$0xff] }
 0x39c   :  { %v373_v4 = vmul.f32 0.03125, %v369_v3 }
 0x39d   :  { %v376_v5 = vsub.f32 %v366_v61, %v374_v2  ;;  %v58_v2 = vld [vmem:[#allocation2 + $0xd0] sm:$0xff] }
 0x39e   :  { %v375_v6 = vsub.f32 %v365_v62, %v373_v4  ;;  %v1567_v3 = vpack.c.bf16 %v58_v2, %v57_v1 }
 0x39f   :  { %v378_v7 = vmul.f32 %v376_v5, %v376_v5 }
 0x3a0   :  { %v377_v8 = vmul.f32 %v375_v6, %v375_v6 }
 0x3a1   :  { %v382_v12 = vsel %vm240_vm5, %v378_v7, 0.0 }
 0x3a2   :  { %383 = vadd.xlane.f32.xlu1 %v382_v12  ;;  %v379_v13 = vsel %vm240_vm5, %v377_v8, 0.0 }
 0x3a3   :  { %380 = vadd.xlane.f32.xlu0 %v379_v13 }
 0x3b9   :  { %497 = vrot.lane.b32.xlu0 %v495_v24, %s1661_s0 }
 0x42f   :  { %v384_v25 = vpop.xlane.xlu1 %383 }
 0x430   :  { %v386_v26 = vmul.f32 0.03125, %v384_v25  ;;  %v381_v27 = vpop.xlane.xlu0 %380 }
 0x431   :  { %v385_v28 = vmul.f32 0.03125, %v381_v27 }
 0x432   :  { %v388_v29 = vadd.f32 1e-05, %v386_v26 }
 0x433   :  { %v387_v30 = vadd.f32 1e-05, %v385_v28 }
 0x434   :  { %1617 = vrsqrt.f32 %v388_v29  ;;  %v498_v57 = vpop.permute.xlu0 %497 }
 0x435   :  { %1619 = vrsqrt.f32 %v387_v30 }
 0x43e   :  { %v1618_v34 = vpop.eup %1617 }
 0x43f   :  { %v1620_v35 = vpop.eup %1619  ;;  %v392_v36 = vmul.f32 %v1618_v34, %v376_v5 }
 0x440   :  { %v391_v37 = vmul.f32 %v1620_v35, %v375_v6 }
 0x441   :  { %v398_v39 = vmul.f32 %v396_v33, %v392_v36 }
 0x442   :  { %v397_v40 = vmul.f32 %v396_v33, %v391_v37 }
 0x443   :  { %v404_v42 = vadd.f32 %v402_v38, %v398_v39 }
 0x444   :  { %v403_v41 = vadd.f32 %v402_v38, %v397_v40 }
 0x446   :  { %1435 = vmatprep.mubr.msk.f32.mxu0 %vm240_vm5, %v403_v41 }
 0x447   :  { %1436 = vmatmul.mubr.msk.f32.vlgmr.msra.gmra.mrb[2].mxu0 %vm240_vm5, %v404_v42 }
 0x448   :  { %1554 = vmatpush3.bf16.msra.mxu0 %v1743_v23 }
 0x449   :  { %1556 = vmatprep.subr.bf16.mxu0 %v1555_v47 }
 0x44c   :  { %1558 = vmatpush3.bf16.msra.mxu0 %v1555_v47 }
 0x44d   :  { %1568 = vmatprep.subr.bf16.mxu0 %v1567_v3 }
 0x51a   :  { %v1437_v58 = vpop.f32.mrb[2].mxu0 }
 0x51b   :  { %v477_v59 = vpop.f32.mrb[3].mxu0  ;;  %v491_v62 = vadd.f32 %v1437_v58, %v489_v56  ;;  %v501_v0 = vadd.f32 %v1437_v58, %v498_v57 }
 0x51c   :  { %v490_v60 = vadd.f32 %v489_v56, %v477_v59  ;;  %v500_v61 = vadd.f32 %v498_v57, %v477_v59 }
 0x51e   :  { %1457 = vmatprep.mubr.msk.f32.mxu0 %vm240_vm5, %v490_v60  ;;  %514 = vrot.lane.b32.xlu1 %v500_v61, %s1662_s1 }
 0x51f   :  { %1458 = vmatmul.mubr.msk.f32.vlgmr.msra.gmra.mrb[4].mxu0 %vm240_vm5, %v491_v62 }
 0x520   :  { %1570 = vmatpush3.bf16.xpose.msra.mxu0 %v1567_v3 }
 0x521   :  { %1580 = vmatprep.subr.bf16.mxu0 %v1543_v50 }
 0x522   :  { %516 = vrot.lane.b32.xlu1 %v501_v0, %s1662_s1 }
 0x526   :  { %507 = vrot.lane.b32.xlu1 %v505_v11, %s1663_s6 }
 0x590   :  { %v515_v4 = vpop.permute.xlu1 %514 }
 0x591   :  { %1446 = vmatprep.mubr.msk.f32.mxu1 %vm240_vm5, %v515_v4 }
 0x594   :  { %v517_v5 = vpop.permute.xlu1 %516 }
 0x595   :  { %1447 = vmatmul.mubr.msk.f32.vlgmr.msra.gmra.mrb[2].mxu1 %vm240_vm5, %v517_v5 }
 0x596   :  { %1562 = vmatpush3.bf16.msra.mxu1 %v1743_v23  ;;  %v60_v23 = vld [vmem:[#allocation2 + $0xe0] sm:$0xff] }
 0x597   :  { %1564 = vmatprep.subr.bf16.mxu1 %v1555_v47  ;;  %v1571_v25 = vpack.c.bf16 %v60_v23, %v59_v22 }
 0x598   :  { %v508_v20 = vpop.permute.xlu1 %507 }
 0x599   :  { %v511_v21 = vadd.f32 %v1437_v58, %v508_v20  ;;  %v510_v24 = vadd.f32 %v508_v20, %v477_v59  ;;  %v1101_v59 = vrot.slane %v1758_v63, %v270_v43 }
 0x59a   :  { %1566 = vmatpush3.bf16.msra.mxu1 %v1555_v47  ;;  %v44_v47 = vld [vmem:[#allocation2 + $0x60] sm:$0xff] }
 0x59b   :  { %1572 = vmatprep.subr.bf16.mxu1 %v1571_v25  ;;  %v1587_v49 = vpack.c.bf16 %v44_v47, %v43_v46 }
 0x5f2   :  { %v1459_v10 = vpop.f32.mrb[4].mxu0 }
 0x5f3   :  { %v669_v6 = vpop.f32.mrb[5].mxu0 }
 0x668   :  { %v1448_v7 = vpop.f32.mrb[2].mxu1 }
 0x669   :  { %v764_v8 = vmul.f32 %v1459_v10, %v1448_v7  ;;  %v588_v12 = vpop.f32.mrb[3].mxu1 }
 0x66a   :  { %v763_v13 = vmul.f32 %v669_v6, %v588_v12 }
 0x66c   :  { %1475 = vmatprep.mubr.f32.mxu0 %v763_v13 }
 0x66d   :  { %1476 = vmatmul.mubr.f32.vlgmr.msra.gmra.mrb[6].mxu0 %v764_v8 }
 0x66e   :  { %1582 = vmatpush3.bf16.xpose.msra.mxu0 %v1543_v50  ;;  %v46_v50 = vld [vmem:[#allocation2 + $0x70] sm:$0xff] }
 0x66f   :  { %1584 = vmatprep.subr.bf16.mxu0 %v1547_v53  ;;  %v1591_v51 = vpack.c.bf16 %v46_v50, %v45_v48 }
 0x676   :  { %1586 = vmatpush3.bf16.xpose.msra.mxu0 %v1547_v53 }
 0x740   :  { %v1477_v14 = vpop.f32.mrb[6].mxu0 }
 0x741   :  { %v841_v15 = vmul.f32 0.35355338, %v1477_v14  ;;  %v831_v16 = vpop.f32.mrb[7].mxu0 }
 0x742   :  { %v840_v17 = vmul.f32 0.35355338, %v831_v16  ;;  %v1666_v16 = vmov 0.0  }
 0x743   :  { %v846_v18 = vsel %vm842_vm6, %v841_v15, -inf }
 0x744   :  { %847 = vmax.xlane.f32.xlu1 %v846_v18  ;;  %v843_v19 = vsel %vm842_vm6, %v840_v17, -inf }
 0x745   :  { %844 = vmax.xlane.f32.xlu0 %v843_v19 }
 0x755   :  { %682 = vrot.lane.b32.xlu1 %v511_v21, %s1663_s6 }
 0x75b   :  { %680 = vrot.lane.b32.xlu0 %v510_v24, %s1663_s6 }
 0x7d1   :  { %v848_v26 = vpop.xlane.xlu1 %847 }
 0x7d2   :  { %v850_v27 = vsub.f32 %v841_v15, %v848_v26  ;;  %v845_v28 = vpop.xlane.xlu0 %844  ;;  %v1664_v15 = vmov 0.0|0.0  }
 0x7d3   :  { %v849_v29 = vsub.f32 %v840_v17, %v845_v28  ;;  %v1667_v17 = vmov 0   ;;  %v1220_v28 = vrot.slane %v1758_v63, %v282_v55 }
 0x7d4   :  { %v853_v30 = vmul.f32 1.442695, %v850_v27  ;;  %1612 = vset.pattern.permute.xlu0 %v1667_v17 }
 0x7d5   :  { %v851_v31 = vmul.f32 1.442695, %v849_v29  ;;  %v683_v33 = vpop.permute.xlu1 %682 }
 0x7d6   :  { %v681_v32 = vpop.permute.xlu0 %680 }
 0x7d7   :  { %1621 = vpow2.f32 %v851_v31  ;;  %1468 = vmatprep.mubr.msk.f32.mxu1 %vm240_vm5, %v681_v32 }
 0x7d8   :  { %1623 = vpow2.f32 %v853_v30  ;;  %1469 = vmatmul.mubr.msk.f32.vlgmr.msra.gmra.mrb[4].mxu1 %vm240_vm5, %v683_v33 }
 0x7d9   :  { %1574 = vmatpush3.bf16.msra.mxu1 %v1571_v25  ;;  %v1214_v25 = vrot.slane %v1758_v63, %v276_v44 }
 0x7da   :  { %1576 = vmatprep.subr.bf16.mxu1 %v1567_v3 }
 0x7e1   :  { %v1622_v34 = vpop.eup %1621 }
 0x7e2   :  { %v1624_v35 = vpop.eup %1623  ;;  %1482 = vmatprep.mubr.msk.f32.mxu1 %vm842_vm6, %v1622_v34 }
 0x7e3   :  { %1483 = vmatmul.mubr.msk.f32.vlgmr.msra.gmra.mrb[6].mxu1 %vm842_vm6, %v1624_v35 }
 0x7e4   :  { %1578 = vmatpush3.bf16.msra.mxu1 %v1567_v3 }
 0x7e5   :  { %1588 = vmatprep.subr.bf16.mxu1 %v1587_v49 }
 0x8ab   :  { %v1470_v36 = vpop.f32.mrb[4].mxu1 }
 0x8ac   :  { %v754_v37 = vpop.f32.mrb[5].mxu1 }
 0x8b6   :  { %v1484_v38 = vpop.f32.mrb[6].mxu1 }
 0x8b7   :  { %1625 = vrcp.f32 %v1484_v38  ;;  %v927_v39 = vpop.f32.mrb[7].mxu1 }
 0x8b8   :  { %1627 = vrcp.f32 %v927_v39 }
 0x8c1   :  { %v1626_v40 = vpop.eup %1625 }
 0x8c2   :  { %v1628_v41 = vpop.eup %1627  ;;  %v939_v45 = vmul.f32 %v1626_v40, %v1624_v35  ;;  %v1227_v35 = vrot.slane %v1758_v63, 4 }
 0x8c3   :  { %v937_v42 = vmul.f32 %v1628_v41, %v1622_v34 }
 0x8c5   :  { %1489 = vmatprep.mubr.msk.f32.mxu1 %vm842_vm6, %v937_v42 }
 0x8c6   :  { %1490 = vmatmul.mubr.msk.f32.vlgmr.msra.gmra.mrb[8].mxu1 %vm842_vm6, %v939_v45 }
 0x8c7   :  { %1590 = vmatpush3.bf16.msra.mxu1 %v1587_v49 }
 0x8c8   :  { %1592 = vmatprep.subr.bf16.mxu1 %v1591_v51 }
 0x8cb   :  { %1594 = vmatpush3.bf16.msra.mxu1 %v1591_v51 }
 0x8cc   :  { %1595 = vmatprep.subr.bf16.mxu1 %v1664_v15 }
 0x999   :  { %v1491_v52 = vpop.f32.mrb[8].mxu1 }
 0x99a   :  { %v1022_v53 = vmul.f32 %v1491_v52, %v1470_v36  ;;  %v1012_v54 = vpop.f32.mrb[9].mxu1 }
 0x99b   :  { %v1021_v56 = vmul.f32 %v1012_v54, %v754_v37 }
 0x99d   :  { %1500 = vmatprep.mubr.f32.mxu0 %v1021_v56 }
 0x99e   :  { %1501 = vmatmul.mubr.f32.vlgmr.msra.gmra.mrb[8].mxu0 %v1022_v53 }
 0xa71   :  { %v1502_v57 = vpop.f32.mrb[8].mxu0 }
 0xa72   :  { %v1089_v58 = vpop.f32.mrb[9].mxu0 }
 0xa73   :  { %1511 = vmatprep.mubr.msk.f32.mxu1 %vm240_vm5, %v1089_v58 }
 0xa74   :  { %1512 = vmatmul.mubr.msk.f32.vlgmr.msra.gmra.mrb[10].mxu1 %vm240_vm5, %v1502_v57 }
 0xa75   :  { %1518 = vmatprep.mubr.msk.f32.mxu1 %vm1665_vm7, %v1666_v16 }
 0xb47   :  { %v1513_v60 = vpop.f32.mrb[10].mxu1 }
 0xb48   :  { %v1180_v61 = vadd.f32 %v1513_v60, %v1101_v59  ;;  %v1174_v62 = vpop.f32.mrb[11].mxu1 }
 0xb49   :  { %v1175_v0 = vadd.f32 %v1174_v62, %v1101_v59 }
 0xb4a   :  { %v1184_v11 = vmax.f32 %v1180_v61, 0.0 }
 0xb4b   :  { %v1183_v1 = vmax.f32 %v1175_v0, 0.0 }
 0xb4c   :  { %v1188_v2 = vsel %vm240_vm5, %v1184_v11, 0.0 }
 0xb4d   :  { %1189 = vadd.xlane.f32.xlu1 %v1188_v2  ;;  %v1185_v3 = vsel %vm240_vm5, %v1183_v1, 0.0 }
 0xb4e   :  { %1186 = vadd.xlane.f32.xlu0 %v1185_v3 }
 0xbda   :  { %v1190_v4 = vpop.xlane.xlu1 %1189 }
 0xbdb   :  { %v1192_v5 = vmul.f32 0.03125, %v1190_v4  ;;  %v1187_v10 = vpop.xlane.xlu0 %1186 }
 0xbdc   :  { %v1191_v6 = vmul.f32 0.03125, %v1187_v10 }
 0xbdd   :  { %v1194_v7 = vsub.f32 %v1184_v11, %v1192_v5 }
 0xbde   :  { %v1193_v8 = vsub.f32 %v1183_v1, %v1191_v6 }
 0xbdf   :  { %v1196_v13 = vmul.f32 %v1194_v7, %v1194_v7 }
 0xbe0   :  { %v1195_v12 = vmul.f32 %v1193_v8, %v1193_v8 }
 0xbe1   :  { %v1200_v14 = vsel %vm240_vm5, %v1196_v13, 0.0 }
 0xbe2   :  { %v1197_v43 = vsel %vm240_vm5, %v1195_v12, 0.0 }
 0xbe3   :  { %1198 = vadd.xlane.f32.xlu0 %v1197_v43 }
 0xbe7   :  { %1201 = vadd.xlane.f32.xlu0 %v1200_v14 }
 0xbfd   :  { %1225 = vperm.xlu0 %1612, %v1758_v63  }
 0xc70   :  { %v1199_v18 = vpop.xlane.xlu0 %1198 }
 0xc71   :  { %v1203_v19 = vmul.f32 0.03125, %v1199_v18 }
 0xc73   :  { %v1205_v20 = vadd.f32 1e-05, %v1203_v19 }
 0xc74   :  { %v1202_v21 = vpop.xlane.xlu0 %1201 }
 0xc75   :  { %1629 = vrsqrt.f32 %v1205_v20  ;;  %v1204_v22 = vmul.f32 0.03125, %v1202_v21 }
 0xc77   :  { %v1206_v23 = vadd.f32 1e-05, %v1204_v22 }
 0xc79   :  { %1631 = vrsqrt.f32 %v1206_v23 }
 0xc7c   :  { %v1226_v44 = vpop.permute.xlu0 %1225 }
 0xc7d   :  { %v1228_v36 = vrot.slane %v1226_v44, 5 }
 0xc7f   :  { %v1630_v24 = vpop.eup %1629 }
 0xc80   :  { %v1209_v26 = vmul.f32 %v1630_v24, %v1193_v8 }
 0xc82   :  { %v1215_v29 = vmul.f32 %v1214_v25, %v1209_v26 }
 0xc83   :  { %v1632_v27 = vpop.eup %1631 }
 0xc84   :  { %v1210_v30 = vmul.f32 %v1632_v27, %v1194_v7  ;;  %v1221_v32 = vadd.f32 %v1220_v28, %v1215_v29 }
 0xc86   :  { %v1216_v31 = vmul.f32 %v1214_v25, %v1210_v30 }
 0xc88   :  { %v1222_v33 = vadd.f32 %v1220_v28, %v1216_v31 }
 0xc8a   :  { %v1596_v34 = vpack.c.bf16 %v1222_v33, %v1221_v32 }
 0xc8c   :  { %1598 = vmatpush3.bf16.xpose.msk.msra.mxu1 %vm1597_vm8, %v1596_v34 }
 0xc93   :  { %1519 = vmatmul.mubr.msk.f32.vlgmr.msra.gmra.mrb[12].mxu1 %vm240_vm5, %v1227_v35 }
 0xd66   :  { %v1304_v37 = vpop.f32.mrb[12].mxu1 }
 0xd67   :  { %v1305_v9 = vadd.f32 %v1304_v37, %v1228_v36  ;;  %v1520_v55 = vpop.f32.mrb[13].mxu1 }
 0xd69   :  { %1309 = vst.msk [vmem:[%s1804_s3] sm:$0x1] %vm1308_vm9, %v1305_v9 }
 0xd6a   :  { %1314 = vsyncpa [#allocation3], 1 }

</bundles_post_ra>
